<compile_context>
chip_gen: v7x
topology: tpu7x:2x2x1
jax: 0.10.0
libtpu: 0.0.40
codegen_flags: <defaults>
</compile_context>

<pallas_src>
import functools

import jax
import jax.numpy as jnp
from jax import lax
from jax.experimental import pallas as pl
from jax.experimental.pallas import tpu as pltpu


def _focal_loss_kernel(*refs, num_class, gamma, smooth, hw, tl, has_alpha, ragged):
    if has_alpha:
        logit_ref, tgt_ref, alpha_ref, out_ref, acc_ref = refs
    else:
        logit_ref, tgt_ref, out_ref, acc_ref = refs
        alpha_ref = None

    t = pl.program_id(1)
    n_t = pl.num_programs(1)

    @pl.when(t == 0)
    def _init():
        acc_ref[...] = jnp.zeros_like(acc_ref)

    logit = logit_ref[...].astype(jnp.float32)              # (NB, C, TL)
    tgt = tgt_ref[...].astype(jnp.int32)                    # (NB, 1, TL), cast in-kernel
    # torch: idx[idx == 225] = 0   (faithful to the reference module, even though the
    # sentinel looks like a typo for 255)
    tgt = jnp.where(tgt == 225, jnp.int32(0), tgt)

    # classes on the sublane axis; broadcast-compare against the (NB, 1, TL) target
    cls = lax.broadcasted_iota(jnp.int32, (1, num_class, tl), 1)
    one_hot = (cls == tgt).astype(jnp.float32)              # (NB, C, TL)

    # label smoothing folded algebraically:
    #   clip(one_hot, lo, hi) == lo + (hi - lo) * one_hot    (one_hot is 0/1)
    # so sum(clip(one_hot)*logit) == lo*sum(logit) + (hi-lo)*sum(one_hot*logit)
    lo = smooth / (num_class - 1) if num_class > 1 else 0.0
    hi = 1.0 - smooth
    sel = jnp.sum(one_hot * logit, axis=1, keepdims=True)   # (NB, 1, TL)
    tot = jnp.sum(logit, axis=1, keepdims=True)             # (NB, 1, TL)
    pt = lo * tot + (hi - lo) * sel + smooth
    logpt = jnp.log(pt)

    one_m_pt = 1.0 - pt
    if float(gamma).is_integer() and gamma >= 0:
        # integer gamma: unrolled multiplies on the VPU
        powv = jnp.ones_like(one_m_pt)
        for _ in range(int(gamma)):
            powv = powv * one_m_pt
    else:
        # non-integer gamma: jnp.power lowers to EUP log/exp — an otherwise-idle slot
        powv = jnp.power(one_m_pt, gamma)

    loss = -(powv * logpt)                                   # (NB, 1, TL)

    if has_alpha:
        # alpha[idx] gather via the (unsmoothed) one-hot mask; skipped at trace time
        # entirely when alpha is None (the common case)
        a = alpha_ref[...].reshape(1, num_class, 1)
        alpha_row = jnp.sum(one_hot * a, axis=1, keepdims=True)
        loss = loss * alpha_row

    if ragged:
        # mask lanes past H*W in the partial last tile; the mask is applied to `loss`
        # AFTER the log, so OOB-lane garbage / NaN never reaches the accumulator
        col = t * tl + lax.broadcasted_iota(jnp.int32, (1, 1, tl), 2)
        loss = jnp.where(col < hw, loss, 0.0)

    # accumulate lane-dense partials across the t axis; reduce + write back once
    acc_ref[...] += loss

    @pl.when(t == n_t - 1)
    def _finalize():
        out_ref[...] = jnp.sum(acc_ref[...]).reshape(1, 1, 1)


def _pick_tiling(n, c, hw, logit_itemsize, tgt_itemsize):
    """Choose (nb, tl): pixels per grid step sized for HBM streaming and VMEM."""
    # HBM bytes streamed per pixel.
    px_hbm = c * logit_itemsize + tgt_itemsize
    # Conservative per-pixel VMEM footprint: double-buffered inputs + the lane-dense
    # f32 intermediates the kernel materializes (logit upcast, one_hot, sel/tot/pt/
    # logpt/powv/loss/acc). Kept conservative so the same tile also fits v7x VMEM.
    px_vmem = 2 * px_hbm + (2 * c + 10) * 4

    hbm_step_budget = 4 * 1024 * 1024      # target a few MiB of input per grid step
    vmem_budget = 16 * 1024 * 1024         # stay well under the 32 MiB scoped limit
    max_lanes = 128 * 1024                 # hard cap on lanes per step

    px_per_step = min(hbm_step_budget // px_hbm, vmem_budget // px_vmem, max_lanes)
    px_per_step = max(128, int(px_per_step))

    if hw <= px_per_step:
        tl = hw                            # full spatial extent in one tile: no ragged
        nb = max(1, min(n, px_per_step // max(1, hw)))
        # keep >= 2 batch blocks when possible: a shardable "parallel" axis for the
        # two TensorCores on v7x, essentially free elsewhere
        if n >= 2:
            nb = min(nb, max(1, n // 2))
        while n % nb != 0:                 # batch blocks must tile N exactly
            nb -= 1
    else:
        nb = 1
        tl = max(128, (px_per_step // 128) * 128)
        # prefer a nearby 128-multiple that divides hw exactly (drops the ragged mask)
        cand = tl
        floor = max(128, tl - 32 * 128)
        while cand >= floor:
            if hw % cand == 0:
                tl = cand
                break
            cand -= 128
        tl = min(tl, hw)
    return nb, tl


def focal_loss(logit, target, *, alpha=None, gamma=2.0, balance_index=0,
               smooth=1e-5, size_average=True):
    """JAX/Pallas equivalent of FocalLoss.forward (apply_nonlin=None)."""
    if smooth is None:
        smooth = 0.0
    if smooth < 0 or smooth > 1.0:
        raise ValueError("smooth value should be in [0,1]")

    n, c = int(logit.shape[0]), int(logit.shape[1])
    hw = 1
    for d in logit.shape[2:]:
        hw *= int(d)

    # Keep the NCHW layout: only free reshapes, no transpose, no wrapper dtype pass.
    logit3 = logit.reshape(n, c, hw)
    tgt3 = target.reshape(n, 1, hw)          # native dtype (int32/uint8/...), cast in-kernel

    logit_itemsize = jnp.dtype(logit.dtype).itemsize
    tgt_itemsize = jnp.dtype(tgt3.dtype).itemsize
    nb, tl = _pick_tiling(n, c, hw, logit_itemsize, tgt_itemsize)
    n_b = n // nb
    n_t = pl.cdiv(hw, tl)
    ragged = (hw % tl) != 0

    # alpha -> (C, 1) f32 on the sublane axis (mirrors the torch __init__/forward glue)
    has_alpha = alpha is not None
    if alpha is None:
        alpha_vec = None
    elif isinstance(alpha, (list, tuple)):
        a = jnp.asarray(alpha, jnp.float32).reshape(c, 1)
        a = a / a.sum()
        alpha_vec = 1.0 / a
    elif isinstance(alpha, float):
        alpha_vec = jnp.full((c, 1), 1.0 - alpha, jnp.float32)
        alpha_vec = alpha_vec.at[balance_index, 0].set(alpha)
    else:
        raise TypeError("Not support alpha type")

    kernel = functools.partial(
        _focal_loss_kernel, num_class=c, gamma=gamma, smooth=float(smooth),
        hw=hw, tl=tl, has_alpha=has_alpha, ragged=ragged)

    in_specs = [
        pl.BlockSpec((nb, c, tl), lambda b, t: (b, 0, t)),   # logit  (NB, C, TL)
        pl.BlockSpec((nb, 1, tl), lambda b, t: (b, 0, t)),   # target (NB, 1, TL)
    ]
    inputs = [logit3, tgt3]
    if has_alpha:
        in_specs.append(pl.BlockSpec((c, 1), lambda b, t: (0, 0)))  # alpha (C, 1)
        inputs.append(alpha_vec)

    m = n * hw
    transc = 1 if (float(gamma).is_integer() and gamma >= 0) else 2
    cost = pl.CostEstimate(
        flops=m * (6 * c + 12),
        transcendentals=m * transc,
        bytes_accessed=m * (c * logit_itemsize + tgt_itemsize) + n_b * 4 + c * 4)

    partials = pl.pallas_call(
        kernel,
        out_shape=jax.ShapeDtypeStruct((n_b, 1, 1), jnp.float32),
        grid=(n_b, n_t),
        in_specs=in_specs,
        out_specs=pl.BlockSpec((1, 1, 1), lambda b, t: (b, 0, 0)),
        scratch_shapes=[pltpu.VMEM((nb, 1, tl), jnp.float32)],
        compiler_params=pltpu.CompilerParams(
            dimension_semantics=("parallel", "arbitrary"),
            vmem_limit_bytes=32 * 1024 * 1024),
        cost_estimate=cost,
    )(*inputs)

    total = jnp.sum(partials)                # tiny f32 tree-reduce of per-batch partials
    if size_average:
        return total / jnp.float32(m)
    return total


def _focal_loss_ref(logit, target, *, gamma=2.0, smooth=1e-5):
    """Pure-JAX reference of the torch forward (alpha=None, size_average=True)."""
    n, c = logit.shape[0], logit.shape[1]
    logit2 = logit.reshape(n, c, -1).transpose(0, 2, 1).reshape(-1, c)
    tgt = target.reshape(-1).astype(jnp.int32)
    tgt = jnp.where(tgt == 225, 0, tgt)
    one_hot = jax.nn.one_hot(tgt, c, dtype=jnp.float32)
    one_hot_s = jnp.clip(one_hot, smooth / (c - 1), 1.0 - smooth)
    pt = jnp.sum(one_hot_s * logit2, axis=1) + smooth
    logpt = jnp.log(pt)
    loss = -jnp.power(1.0 - pt, gamma) * logpt
    return jnp.mean(loss)


if __name__ == "__main__":
    key = jax.random.PRNGKey(0)
    k1, k2 = jax.random.split(key)

    N, C, H, W = 2, 4, 16, 16
    # logit plays the role of class probabilities (apply_nonlin=None in the module,
    # callers typically pass softmax outputs), so build softmax-normalized inputs.
    raw = jax.random.normal(k1, (N, C, H, W), dtype=jnp.float32)
    logit = jax.nn.softmax(raw, axis=1)
    target = jax.random.randint(k2, (N, 1, H, W), 0, C, dtype=jnp.int32)

    loss = focal_loss(logit, target, gamma=2.0, smooth=1e-5, size_average=True)
    loss = jax.block_until_ready(loss)

    ref = _focal_loss_ref(logit, target, gamma=2.0, smooth=1e-5)
    assert jnp.allclose(loss, ref, rtol=1e-5, atol=1e-6), (loss, ref)

    print("KERNEL_OK")
</pallas_src>

<mosaic_0001>
module attributes {stable_mosaic.version = 11 : i64} {
  func.func @_focal_loss_kernel(%arg0: i32, %arg1: i32, %arg2: memref<1x4x256xf32, #tpu.memory_space<vmem>>, %arg3: memref<1x1x256xi32, #tpu.memory_space<vmem>>, %arg4: memref<1x1x1xf32, #tpu.memory_space<vmem>>, %arg5: memref<1x1x256xf32, #tpu.memory_space<vmem>>) attributes {dimension_semantics = [#tpu.dimension_semantics<parallel>, #tpu.dimension_semantics<arbitrary>], iteration_bounds = array<i64: 2, 1>, scalar_prefetch = 0 : i64, scratch_operands = 1 : i64, tpu.core_type = #tpu.core_type<tc>, window_params = [{transform_indices = @transform_0, window_bounds = array<i64: 1, 4, 256>}, {transform_indices = @transform_1, window_bounds = array<i64: 1, 1, 256>}, {transform_indices = @transform_2, window_bounds = array<i64: 1, 1, 1>}]} {
    %c0_i32 = arith.constant 0 : i32
    %0 = arith.cmpi eq, %arg1, %c0_i32 : i32
    %1 = arith.extui %0 : i1 to i32
    %c0_i32_0 = arith.constant 0 : i32
    %2 = arith.cmpi ne, %1, %c0_i32_0 : i32
    scf.if %2 {
      %cst_22 = arith.constant 0.000000e+00 : f32
      %41 = vector.broadcast %cst_22 : f32 to vector<1x1x256xf32>
      %c0_23 = arith.constant 0 : index
      %c0_24 = arith.constant 0 : index
      %c0_25 = arith.constant 0 : index
      %42 = vector.load %arg5[%c0_23, %c0_24, %c0_25] : memref<1x1x256xf32, #tpu.memory_space<vmem>>, vector<1x1x256xf32>
      tpu.vector_store %arg5[%c0_23, %c0_24, %c0_25], %41 {strides = array<i32>} : memref<1x1x256xf32, #tpu.memory_space<vmem>>, vector<1x1x256xf32>,
    } else {
    }
    %c0 = arith.constant 0 : index
    %c0_1 = arith.constant 0 : index
    %c0_2 = arith.constant 0 : index
    %3 = vector.load %arg2[%c0, %c0_1, %c0_2] : memref<1x4x256xf32, #tpu.memory_space<vmem>>, vector<1x4x256xf32>
    %c0_3 = arith.constant 0 : index
    %c0_4 = arith.constant 0 : index
    %c0_5 = arith.constant 0 : index
    %4 = vector.load %arg3[%c0_3, %c0_4, %c0_5] : memref<1x1x256xi32, #tpu.memory_space<vmem>>, vector<1x1x256xi32>
    %c225_i32 = arith.constant 225 : i32
    %5 = vector.broadcast %c225_i32 : i32 to vector<1x1x256xi32>
    %6 = arith.cmpi eq, %4, %5 : vector<1x1x256xi32>
    %c0_i32_6 = arith.constant 0 : i32
    %7 = vector.broadcast %c0_i32_6 : i32 to vector<1x1x256xi32>
    %8 = arith.select %6, %7, %4 : vector<1x1x256xi1>, vector<1x1x256xi32>
    %9 = tpu.iota {dimensions = array<i32: 1>} : vector<1x4x256xi32>
    %10 = vector.broadcast %8 : vector<1x1x256xi32> to vector<1x4x256xi32>
    %11 = arith.cmpi eq, %9, %10 : vector<1x4x256xi32>
    %12 = arith.extui %11 : vector<1x4x256xi1> to vector<1x4x256xi32>
    %13 = arith.sitofp %12 : vector<1x4x256xi32> to vector<1x4x256xf32>
    %14 = arith.mulf %13, %3 : vector<1x4x256xf32>
    %cst = arith.constant dense<0.000000e+00> : vector<1x256xf32>
    %15 = vector.multi_reduction <add>, %14, %cst [1] : vector<1x4x256xf32> to vector<1x256xf32>
    %16 = vector.shape_cast %15 : vector<1x256xf32> to vector<1x1x256xf32>
    %cst_7 = arith.constant dense<0.000000e+00> : vector<1x256xf32>
    %17 = vector.multi_reduction <add>, %3, %cst_7 [1] : vector<1x4x256xf32> to vector<1x256xf32>
    %18 = vector.shape_cast %17 : vector<1x256xf32> to vector<1x1x256xf32>
    %cst_8 = arith.constant 3.33333332E-6 : f32
    %19 = vector.broadcast %cst_8 : f32 to vector<1x1x256xf32>
    %20 = arith.mulf %19, %18 : vector<1x1x256xf32>
    %cst_9 = arith.constant 0.999986648 : f32
    %21 = vector.broadcast %cst_9 : f32 to vector<1x1x256xf32>
    %22 = arith.mulf %21, %16 : vector<1x1x256xf32>
    %23 = arith.addf %20, %22 : vector<1x1x256xf32>
    %cst_10 = arith.constant 9.99999974E-6 : f32
    %24 = vector.broadcast %cst_10 : f32 to vector<1x1x256xf32>
    %25 = arith.addf %23, %24 : vector<1x1x256xf32>
    %26 = math.log %25 : vector<1x1x256xf32>
    %cst_11 = arith.constant 1.000000e+00 : f32
    %27 = vector.broadcast %cst_11 : f32 to vector<1x1x256xf32>
    %28 = arith.subf %27, %25 : vector<1x1x256xf32>
    %cst_12 = arith.constant 1.000000e+00 : f32
    %29 = vector.broadcast %cst_12 : f32 to vector<1x1x256xf32>
    %30 = arith.mulf %29, %28 : vector<1x1x256xf32>
    %31 = arith.mulf %30, %28 : vector<1x1x256xf32>
    %32 = arith.mulf %31, %26 : vector<1x1x256xf32>
    %cst_13 = arith.constant 0.000000e+00 : f32
    %33 = vector.broadcast %cst_13 : f32 to vector<1x1x256xf32>
    %34 = arith.subf %33, %32 : vector<1x1x256xf32>
    %c0_14 = arith.constant 0 : index
    %c0_15 = arith.constant 0 : index
    %c0_16 = arith.constant 0 : index
    %35 = vector.load %arg5[%c0_14, %c0_15, %c0_16] : memref<1x1x256xf32, #tpu.memory_space<vmem>>, vector<1x1x256xf32>
    %36 = arith.addf %35, %34 : vector<1x1x256xf32>
    %c0_17 = arith.constant 0 : index
    %c0_18 = arith.constant 0 : index
    %c0_19 = arith.constant 0 : index
    %37 = vector.load %arg5[%c0_17, %c0_18, %c0_19] : memref<1x1x256xf32, #tpu.memory_space<vmem>>, vector<1x1x256xf32>
    tpu.vector_store %arg5[%c0_17, %c0_18, %c0_19], %36 {strides = array<i32>} : memref<1x1x256xf32, #tpu.memory_space<vmem>>, vector<1x1x256xf32>,
    %c0_i32_20 = arith.constant 0 : i32
    %38 = arith.cmpi eq, %arg1, %c0_i32_20 : i32
    %39 = arith.extui %38 : i1 to i32
    %c0_i32_21 = arith.constant 0 : i32
    %40 = arith.cmpi ne, %39, %c0_i32_21 : i32
    scf.if %40 {
      %c0_22 = arith.constant 0 : index
      %c0_23 = arith.constant 0 : index
      %c0_24 = arith.constant 0 : index
      %41 = vector.load %arg5[%c0_22, %c0_23, %c0_24] : memref<1x1x256xf32, #tpu.memory_space<vmem>>, vector<1x1x256xf32>
      %42 = vector.shape_cast %41 : vector<1x1x256xf32> to vector<1x1x1x256xf32>
      %cst_25 = arith.constant dense<0.000000e+00> : vector<1xf32>
      %43 = vector.multi_reduction <add>, %42, %cst_25 [1, 2, 3] : vector<1x1x1x256xf32> to vector<1xf32>
      %44 = vector.shape_cast %43 : vector<1xf32> to vector<1x1x1x1xf32>
      %45 = vector.extract %44[0, 0, 0, 0] : f32 from vector<1x1x1x1xf32>
      %46 = vector.broadcast %45 : f32 to vector<1x1x1xf32>
      %c0_26 = arith.constant 0 : index
      %c0_27 = arith.constant 0 : index
      %c0_28 = arith.constant 0 : index
      %47 = vector.load %arg4[%c0_26, %c0_27, %c0_28] : memref<1x1x1xf32, #tpu.memory_space<vmem>>, vector<1x1x1xf32>
      tpu.vector_store %arg4[%c0_26, %c0_27, %c0_28], %46 {strides = array<i32>} : memref<1x1x1xf32, #tpu.memory_space<vmem>>, vector<1x1x1xf32>,
    } else {
    }
    return
  }
  func.func @transform_0(%arg0: i32, %arg1: i32) -> (i32, i32, i32) {
    %c0_i32 = arith.constant 0 : i32
    %c0_i32_0 = arith.constant 0 : i32
    return %arg0, %c0_i32, %arg1 : i32, i32, i32
  }
  func.func @transform_1(%arg0: i32, %arg1: i32) -> (i32, i32, i32) {
    %c0_i32 = arith.constant 0 : i32
    %c0_i32_0 = arith.constant 0 : i32
    return %arg0, %c0_i32, %arg1 : i32, i32, i32
  }
  func.func @transform_2(%arg0: i32, %arg1: i32) -> (i32, i32, i32) {
    %c0_i32 = arith.constant 0 : i32
    %c0_i32_0 = arith.constant 0 : i32
    %c0_i32_1 = arith.constant 0 : i32
    return %arg0, %c0_i32, %c0_i32_0 : i32, i32, i32
  }
}

</mosaic_0001>

<bundles_post_ra>
// kernel: tpu_custom_call.1
= control target key start
LH: loop header
LB: loop body
LE: loop exit
PB: predicated region body
PF: predicated region fallthrough
CT: control target
= control target key end

     0   :  { %7 = vsyncpa [#allocation4], 0  ;;  %s869_s0 = inlined_call_operand.hbm [shape: f32[2,4,256], index: 0, kind: input, shape index: {}]   ;;  %s870_s1 = inlined_call_operand.hbm [shape: s32[2,1,256], index: 1, kind: input, shape index: {}]   ;;  %s871_s2 = inlined_call_operand.vmem [shape: f32[2,1,1], index: 2, kind: output, shape index: {}]  }
   0x1   :  { %9 = vsyncpa [#allocation4 + $0x1], 0 }
   0x2   :  { %10 = vsyncpa [#allocation6], 0 }
   0x3   :  { %12 = vsyncpa [#allocation6 + $0x1], 0  ;;  %s676_s9 = smov 0   ;;  %s678_s10 = smov 0  }
   0x4   :  { %s680_s11 = smov 0   ;;  %s682_s12 = smov 0  }
   0x5   :  { %s684_s13 = smov 0   ;;  %s686_s14 = smov 0  }
   0x6 LB: > { %s453_s15 = sadd.s32 4294967295, %s655_s14   ;;  %s30_s16 = sadd.s32 1, %s651_s13  ;;  %s655_s14 = sphi %s686_s14, %s18_s14   ;;  %s651_s13 = sphi %s684_s13, %s887_s13   ;;  %s647_s12 = sphi %s682_s12, %s886_s12   ;;  %s643_s11 = sphi %s680_s11, %s885_s11   ;;  %s639_s10 = sphi %s678_s10, %s884_s10   ;;  %s635_s9 = sphi %s676_s9, %s883_s9  }
   0x7   : > { %p32_p0 = scmp.ge.s32.totalorder %s30_s16, 2  ;;  %s39_s17 = sadd.s32 1, %s643_s11 }
   0x8   : > { %p46_p1 = scmp.ne.s32.totalorder %s643_s11, %s639_s10  ;;  %p47_p2 = scmp.eq.s32.totalorder %s655_s14, 0 }
   0x9   : > { %s889_s16 = smov (%p32_p0, %s30_s16), 0  ;;  %p52_p4 = scmp.ne.s32.totalorder %s639_s10, %s635_s9 }
   0xa   : > { %p712_p3 = por %p47_p2, %p46_p1  ;;  %s34_s19 = ssub.s32 %s651_s13, %s889_s16 }
   0xb   : > { %p53_p5 = scmp.eq.s32.totalorder %s453_s15, 0  ;;  %p37_p6 = scmp.eq.s32.totalorder %s34_s19, 0 }
   0xc   : > { %p485_p8 = scmp.lt.s32.totalorder %s655_s14, 2  ;;  %s728_s22 = sand.u32 1, %s643_s11  }
   0xd   : > { %p719_p7 = por %p53_p5, %p52_p4  ;;  %s470_s23 = sshll.u32 %s651_s13, 7 }
   0xe   : > { %s725_s21 = scalar_select %p37_p6, %s643_s11, %s39_s17  }
   0xf   : > { %s874_s20 = scalar_select %p719_p7, 1, 0 }
  0x10   : > { %s457_s24 = sshll.u32 %s728_s22, 3  ;;  %s735_s27 = scalar_lea.hbm %s869_s0, %s470_s23 }
  0x11   : > { %s134_s28 = scalar_lea.vmem [#allocation3], %s457_s24  ;;  %p739_p9 = pnand %p485_p8, %p712_p3 }
  0x12   : > { %s144_s29 = sshll.u32 %s134_s28, 4  ;;  %s131_s3 = scalar_lea.sflag [#allocation4], %s728_s22  ;;  %s743_s29 = int_to_ptr.vmem [resolvable:$true] %s144_s29 }
  0x13   : > { %s541_s4 = scalar_lea.hbm %s735_s27, 128  ;;  %p543_p13 = pneg %p739_p9 }
  0x14   : > { %p542_p12 = scmp.ne.s32.totalorder %s735_s27, %s541_s4  ;;  %s546_s7 = scalar_lea.hbm %s869_s0, 256 }
  0x15   : > { %p547_p2 = scmp.lt.u32.totalorder %s735_s27, %s869_s0  ;;  %p548_p3 = scmp.lt.u32.totalorder %s546_s7, %s541_s4 }
  0x16   : > { %p544_p0 = pnand %p543_p13, %p542_p12  ;;  %p550_p5 = scmp.lt.u32.totalorder %s541_s4, %s735_s27 }
  0x17   : > { %p549_p4 = por %p548_p3, %p547_p2 }
  0x18   : > { %p545_p1 = pneg %p544_p0 }
  0x19   : > { %p551_p6 = por %p550_p5, %p549_p4 }
  0x1b   : > { %p552_p8 = pnand %p551_p6, %p545_p1 }
  0x1d   : > { %555 = shalt.err (!%p552_p8)
}
  0x1e   : > { %s556_s15 = scalar_lea.vmem %s743_s29, 128  ;;  %s657_s17 = smov [#allocation3]  }
  0x1f   : > { %p557_p12 = scmp.ne.s32.totalorder %s743_s29, %s556_s15  ;;  %s561_s18 = sshll.u32 %s657_s17, 4  ;;  %s562_s18 = int_to_ptr.vmem [resolvable:$false] %s561_s18 }
  0x20   : > { %s563_s19 = scalar_lea.vmem %s562_s18, 256  ;;  %p564_p11 = scmp.lt.s32.totalorder %s743_s29, %s562_s18 }
  0x21   : > { %p559_p0 = pnand %p557_p12, %p543_p13  ;;  %p565_p2 = scmp.lt.s32.totalorder %s563_s19, %s556_s15 }
  0x23   : > { %p560_p10 = pneg %p559_p0  ;;  %p566_p3 = por %p565_p2, %p564_p11 }
  0x25   : > { %p567_p4 = pnand %p566_p3, %p560_p10 }
  0x27   : > { %570 = shalt.err (!%p567_p4)
}
  0x28   : > { %481 = dma.hbm_to_vmem [thread:$0]  (!%p739_p9), %s735_s27, 128, %s743_s29, %s131_s3  }
  0x29   : > { %p876_p1 = scmp.lt.s32.totalorder %s655_s14, 3  ;;  %p877_p5 = scmp.ge.s32.totalorder %s655_s14, 1 }
  0x2a   : > { %s460_s24 = sshll.u32 %s728_s22, 1  ;;  %s471_s25 = sshll.u32 %s651_s13, 5 }
  0x2b   : > { %p777_p6 = pnand %p877_p5, %p876_p1  ;;  %s786_s4 = scalar_lea.hbm %s870_s1, %s471_s25 }
  0x2c   : > { %s155_s5 = scalar_lea.vmem [#allocation5], %s460_s24  ;;  %s152_s27 = scalar_lea.sflag [#allocation6], %s728_s22 }
  0x2d   : > { %s878_s23 = scalar_select %p777_p6, 1, 0 }
  0x2e   : > { %s165_s6 = sshll.u32 %s155_s5, 4  ;;  %s571_s29 = scalar_lea.hbm %s786_s4, 32  ;;  %s166_s6 = int_to_ptr.vmem [resolvable:$true] %s165_s6 }
  0x2f   : > { %p572_p10 = scmp.ne.s32.totalorder %s786_s4, %s571_s29  ;;  %s576_s8 = scalar_lea.hbm %s870_s1, 64 }
  0x30   : > { %p577_p12 = scmp.lt.u32.totalorder %s786_s4, %s870_s1  ;;  %p578_p0 = scmp.lt.u32.totalorder %s576_s8, %s571_s29 }
  0x31   : > { %p574_p11 = pnand %p572_p10, %p543_p13  ;;  %p580_p3 = scmp.lt.u32.totalorder %s571_s29, %s786_s4 }
  0x32   : > { %p579_p2 = por %p578_p0, %p577_p12 }
  0x33   : > { %p575_p8 = pneg %p574_p11 }
  0x34   : > { %p581_p4 = por %p580_p3, %p579_p2 }
  0x36   : > { %p582_p1 = pnand %p581_p4, %p575_p8 }
  0x38   : > { %585 = shalt.err (!%p582_p1)
}
  0x39   : > { %s586_s22 = scalar_lea.vmem %s166_s6, 32  ;;  %s658_s17 = smov [#allocation5]  }
  0x3a   : > { %p587_p5 = scmp.ne.s32.totalorder %s166_s6, %s586_s22  ;;  %s591_s18 = sshll.u32 %s658_s17, 4  ;;  %s592_s18 = int_to_ptr.vmem [resolvable:$false] %s591_s18 }
  0x3b   : > { %s593_s19 = scalar_lea.vmem %s592_s18, 64  ;;  %p594_p7 = scmp.lt.s32.totalorder %s166_s6, %s592_s18 }
  0x3c   : > { %p589_p10 = pnand %p587_p5, %p543_p13  ;;  %p595_p6 = scmp.lt.s32.totalorder %s593_s19, %s586_s22 }
  0x3e   : > { %p590_p11 = pneg %p589_p10  ;;  %p596_p0 = por %p595_p6, %p594_p7 }
  0x40   : > { %p597_p12 = pnand %p596_p0, %p590_p11 }
  0x42   : > { %600 = shalt.err (!%p597_p12)
}
  0x43   : > { %484 = dma.hbm_to_vmem [thread:$0]  (!%p739_p9), %s786_s4, 32, %s166_s6, %s152_s27  }
  0x44   : > { %p879_p8 = scmp.ne.s32.totalorder %s878_s23, 0 }
  0x45   : > { %s176_s24 = sand.u32 (!%p879_p8), 1, %s639_s10   ;;  %p880_p13 = scmp.ne.s32.totalorder (!%p879_p8), %s874_s20, 0 }
  0x46   : > { %174 = sbr.rel (%p879_p8) target bundleno = 357 (0x165), region = 28  ;;  %s464_s25 = sshll.u32 (!%p879_p8), %s176_s24, 3 }
  0x47   : > { %s177_s26 = scalar_lea.sflag (!%p879_p8), [#allocation4], %s176_s24  ;;  %s180_s28 = scalar_lea.vmem (!%p879_p8), [#allocation3], %s464_s25 }
  0x4d   : > { %626 = dma.done.wait (%p880_p13), %s177_s26, 128  }
  0x4e   : > { %628 = vsyncadd (%p880_p13), %s177_s26, 4294967168  ;;  %s465_s5 = sshll.u32 %s176_s24, 1  ;;  %s186_s29 = scalar_lea.sflag [#allocation6], %s176_s24 }
  0x4f   : > { %s189_s30 = scalar_lea.vmem [#allocation5], %s465_s5 }
  0x50   : > { %630 = dma.done.wait (%p880_p13), %s186_s29, 32  }
  0x51   : > { %632 = vsyncadd (%p880_p13), %s186_s29, 4294967264  ;;  %v222_v0 = vlaneseq  ;;  %v659_v3 = vmov 0.0   ;;  %vm252_vm1 = vcmask 1043456   ;;  %v227_v6 = vld [vmem:[%s180_s28] sm:$0xff]  ;;  %v228_v7 = vld [vmem:[%s189_s30] sm:$0x3] }
  0x52   : > { %vm229_vm2 = vcmp.eq.s32.totalorder %v228_v7, 225  ;;  %v248_v8 = vcombine.high %v227_v6, %v227_v6  ;;  %v267_v9 = vsel %vm252_vm1, %v227_v6, 0.0  ;;  %v660_v54 = vmov 1966171168   ;;  %p215_p7 = scmp.lt.s32.totalorder %s647_s12, 1 }
  0x53   : > { %vm819_vm0 = vcmp.lt.s32.totalorder %v222_v0, 256  ;;  %v823_v2 = vshrl.u32 %v222_v0, 7  ;;  %v230_v10 = vsel %vm229_vm2, 0, %v228_v7  ;;  %v268_v11 = vrot.slane %v267_v9, 4 }
  0x54   : > { %226 = vst.msk [vmem:[#allocation2] sm:$0x3] %vm819_vm0, %v659_v3  ;;  %v274_v14 = vsel %vm252_vm1, %v248_v8, 0.0  ;;  %v306_v55 = vunpack.c.l.s4 %v660_v54  ;;  %vm341_vm5 = vcmask 1040384   ;;  %s891_s12 = smov (!%p215_p7, %s647_s12), 1  ;;  %vm355_vm6 = vcmask 0  }
  0x55   : > { %v235_v4 = vsub.s32 0, %v823_v2  ;;  %v239_v5 = vsub.s32 1, %v823_v2  ;;  %v269_v15 = vadd.f32 %v268_v11, %v267_v9  ;;  %v275_v16 = vrot.slane %v274_v14, 4  ;;  %s217_s4 = scalar_lea.vmem %s871_s2, %s891_s12 }
  0x56   : > { %v307_v62 = vunpack.c.0.s8 %v306_v55 }
  0x57   : > { %v236_v12 = vrot.slane %v230_v10, %v235_v4  ;;  %v240_v13 = vrot.slane %v230_v10, %v239_v5  ;;  %v270_v19 = vrot.slane %v269_v15, 2  ;;  %v276_v20 = vadd.f32 %v275_v16, %v274_v14 }
  0x58   : > { %v310_v7 = vsub.s32 %v307_v62, %v823_v2 }
  0x59   : > { %vm241_vm3 = vcmp.eq.s32.totalorder %v823_v2, %v236_v12  ;;  %vm242_vm4 = vcmp.eq.s32.totalorder %v823_v2, %v240_v13  ;;  %v271_v23 = vadd.f32 %v270_v19, %v269_v15  ;;  %v277_v24 = vrot.slane %v276_v20, 2 }
  0x5a   : > { %v466_v17 = vsel %vm241_vm3, 1.0, %v659_v3  ;;  %v467_v18 = vsel %vm242_vm4, 1.0, %v659_v3 }
  0x5b   : > { %v250_v21 = vmul.f32 %v466_v17, %v227_v6  ;;  %v251_v22 = vmul.f32 %v467_v18, %v248_v8  ;;  %v278_v29 = vadd.f32 %v277_v24, %v276_v20  ;;  %v272_v32 = vrot.slane %v271_v23, 1  ;;  %v301_v10 = vld [vmem:[#allocation2] sm:$0x3] }
  0x5d   : > { %v253_v25 = vsel %vm252_vm1, %v250_v21, 0.0  ;;  %v260_v26 = vsel %vm252_vm1, %v251_v22, 0.0  ;;  %v279_v33 = vrot.slane %v278_v29, 1  ;;  %v273_v38 = vadd.f32 %v272_v32, %v271_v23 }
  0x5e   : > { %v254_v27 = vrot.slane %v253_v25, 4  ;;  %v261_v28 = vrot.slane %v260_v26, 4 }
  0x5f   : > { %v280_v39 = vadd.f32 %v279_v33, %v278_v29  ;;  %v281_v44 = vmul.f32 3.3333333e-06, %v273_v38 }
  0x60   : > { %v255_v30 = vadd.f32 %v254_v27, %v253_v25  ;;  %v262_v31 = vadd.f32 %v261_v28, %v260_v26 }
  0x61   : > { %v282_v45 = vmul.f32 3.3333333e-06, %v280_v39 }
  0x62   : > { %v256_v34 = vrot.slane %v255_v30, 2  ;;  %v263_v35 = vrot.slane %v262_v31, 2 }
  0x64   : > { %v257_v36 = vadd.f32 %v256_v34, %v255_v30  ;;  %v264_v37 = vadd.f32 %v263_v35, %v262_v31 }
  0x66   : > { %v258_v40 = vrot.slane %v257_v36, 1  ;;  %v265_v41 = vrot.slane %v264_v37, 1 }
  0x68   : > { %v259_v42 = vadd.f32 %v258_v40, %v257_v36  ;;  %v266_v43 = vadd.f32 %v265_v41, %v264_v37 }
  0x6a   : > { %v283_v46 = vmul.f32 0.99998665, %v259_v42  ;;  %v284_v47 = vmul.f32 0.99998665, %v266_v43 }
  0x6c   : > { %v285_v48 = vadd.f32 %v283_v46, %v281_v44  ;;  %v286_v49 = vadd.f32 %v284_v47, %v282_v45 }
  0x6e   : > { %v287_v50 = vadd.f32 1e-05, %v285_v48  ;;  %v288_v51 = vadd.f32 1e-05, %v286_v49 }
  0x70   : > { %537 = vlog2.f32 %v287_v50  ;;  %v293_v52 = vsub.f32 1.0, %v287_v50  ;;  %v294_v53 = vsub.f32 1.0, %v288_v51 }
  0x71   : > { %539 = vlog2.f32 %v288_v51 }
  0x72   : > { %v295_v56 = vmul.f32 %v293_v52, %v293_v52  ;;  %v296_v58 = vmul.f32 %v294_v53, %v294_v53 }
  0x7a   : > { %v538_v57 = vpop.eup %537 }
  0x7b   : > { %v540_v59 = vpop.eup %539  ;;  %v290_v60 = vmul.f32 0.6931472, %v538_v57 }
  0x7c   : > { %v292_v61 = vmul.f32 0.6931472, %v540_v59 }
  0x7d   : > { %v297_v63 = vmul.f32 %v295_v56, %v290_v60 }
  0x7e   : > { %v298_v0 = vmul.f32 %v296_v58, %v292_v61 }
  0x7f   : > { %v299_v3 = vsub.f32 0.0, %v297_v63 }
  0x80   : > { %v300_v6 = vsub.f32 0.0, %v298_v0 }
  0x82   : > { %v304_v8 = vcombine.low %v299_v3, %v300_v6 }
  0x84   : > { %v311_v9 = vrot.slane %v304_v8, %v310_v7 }
  0x86   : > { %v318_v11 = vrot.slane %v311_v9, %v310_v7 }
  0x88   : > { %v320_v12 = vadd.f32 %v318_v11, %v301_v10 }
  0x8a   : > { %325 = vst.msk [vmem:[#allocation2] sm:$0x3] %vm819_vm0, %v320_v12 }
  0x91   : > { %v329_v13 = vld [vmem:[#allocation2] sm:$0x3] }
  0x92   : > { %v334_v14 = vrot.slane %v329_v13, %v235_v4  ;;  %v338_v15 = vrot.slane %v329_v13, %v239_v5 }
  0x94   : > { %v342_v16 = vsel %vm341_vm5, %v334_v14, 0.0  ;;  %v343_v17 = vsel %vm341_vm5, %v338_v15, 0.0 }
  0x95   : > { %v344_v18 = vadd.f32 %v343_v17, %v342_v16 }
  0x97   : > { %345 = vadd.xlane.f32.xlu0 %v344_v18 }
 0x124   : > { %v346_v19 = vpop.xlane.xlu0 %345 }
 0x125   : > { %v347_v20 = vrot.slane %v346_v19, 4 }
 0x127   : > { %v348_v21 = vadd.f32 %v347_v20, %v346_v19 }
 0x129   : > { %v349_v22 = vrot.slane %v348_v21, 2 }
 0x12b   : > { %v350_v1 = vadd.f32 %v349_v22, %v348_v21 }
 0x12d   : > { %v351_v23 = vrot.slane %v350_v1, 1 }
 0x12f   : > { %v352_v24 = vadd.f32 %v351_v23, %v350_v1 }
 0x131   : > { %472 = vpush %v352_v24 }
 0x162   : > { %s473_s6 = spop %472 }
 0x163   : > { %v354_v2 = vstv %s473_s6 }
 0x164   : > { %356 = vst.msk [vmem:[%s217_s4] sm:$0x1] %vm355_vm6, %v354_v2 }
 0x165 PF: > { %s18_s14 = sadd.s32 1, %s655_s14   ;;  %s883_s9 = smov %s639_s10 }
 0x166   : > { %p15_p9 = scmp.ge.s32.totalorder %s18_s14, 4   ;;  %s884_s10 = smov %s643_s11 }
 0x167   : > { %s885_s11 = smov %s725_s21  ;;  %s886_s12 = smov %s651_s13 }
 0x168   : > { %s887_s13 = smov %s889_s16  ;;  %17 = sbr.rel (!%p15_p9) target bundleno = 6 (0x6), region = 89 }
 0x16f   :  { %374 = vsyncpa [#allocation4], 1 }
 0x170   :  { %376 = vsyncpa [#allocation4 + $0x1], 1 }
 0x171   :  { %377 = vsyncpa [#allocation6], 1 }
 0x172   :  { %379 = vsyncpa [#allocation6 + $0x1], 1 }

</bundles_post_ra>
